<compile_context>
chip_gen: v6e
topology: v6e:2x2x1
jax: 0.10.0
libtpu: 0.0.40
codegen_flags: <defaults>
</compile_context>

<pallas_src>
import functools

import jax
import jax.numpy as jnp
import numpy as np
from jax.experimental import pallas as pl
from jax.experimental.pallas import tpu as pltpu

_LOG_2PI = float(np.log(2.0 * np.pi))


def _relu6(x):
    return jnp.clip(x, 0.0, 6.0)


def _round_up(x, m):
    return ((x + m - 1) // m) * m


def _actor_critic_kernel(
    # inputs
    state_ref, action_ref,
    w1_ref, b1_ref, w2_ref, b2_ref, wh_ref, bh_ref,
    # output: [mu(A) | std(A) | logp(1) | value(1) | entropy(1)]
    out_ref,
    *, action_scaling: float, max_log_of_std: float, action_dim: int,
):
    x = state_ref[...]
    a = action_ref[...].astype(jnp.float32)

    # ----- fused actor|critic trunk: lanes [0:64]=actor hidden, [64:128]=critic hidden
    h = _relu6(jnp.dot(x, w1_ref[...], preferred_element_type=jnp.float32)
               + b1_ref[...])
    h = _relu6(jnp.dot(h.astype(w2_ref.dtype), w2_ref[...],
                       preferred_element_type=jnp.float32)
               + b2_ref[...])

    # ----- fused heads: cols [0:A]=mu preact, [A:2A]=log_std preact, [2A]=value
    head = jnp.dot(h.astype(wh_ref.dtype), wh_ref[...],
                   preferred_element_type=jnp.float32) + bh_ref[...]

    A = action_dim
    mu = jnp.tanh(head[:, 0:A]) * action_scaling
    ls = jnp.clip(head[:, A:2 * A], -max_log_of_std, max_log_of_std)
    std = jnp.log1p(jnp.exp(ls))                         # softplus (bounded input)
    val = head[:, 2 * A:2 * A + 1]

    # ----- Normal(mu, std): log_prob(action).sum(-1), entropy().sum(-1)
    log_std = jnp.log(std)
    inv_std = pl.reciprocal(std)                         # exact (meets 1e-5 check)
    z = (a - mu) * inv_std
    logp = jnp.sum(-0.5 * z * z - log_std - 0.5 * _LOG_2PI, axis=-1, keepdims=True)
    ent = jnp.sum(0.5 + 0.5 * _LOG_2PI + log_std, axis=-1, keepdims=True)

    # ----- direct sliced stores (no concat temp, no pad columns written)
    out_ref[:, 0:A] = mu
    out_ref[:, A:2 * A] = std
    out_ref[:, 2 * A:2 * A + 1] = logp
    out_ref[:, 2 * A + 1:2 * A + 2] = val
    out_ref[:, 2 * A + 2:2 * A + 3] = ent


def xavier_uniform(key, fan_in, fan_out, dtype=jnp.float32):
    bound = float(np.sqrt(6.0 / (fan_in + fan_out)))
    # stored as (in, out)  (transposed vs. PyTorch's (out, in))
    return jax.random.uniform(key, (fan_in, fan_out), dtype, -bound, bound)


def make_params(key, observ_dim, action_dim, hidden=64):
    ks = jax.random.split(key, 7)
    p = {}
    p["w1"] = xavier_uniform(ks[0], observ_dim, hidden)
    p["b1"] = jnp.zeros((1, hidden), jnp.float32)
    p["w2"] = xavier_uniform(ks[1], hidden, hidden)
    p["b2"] = jnp.zeros((1, hidden), jnp.float32)
    p["wmu"] = xavier_uniform(ks[2], hidden, action_dim)
    p["bmu"] = jnp.zeros((1, action_dim), jnp.float32)
    p["wls"] = xavier_uniform(ks[3], hidden, action_dim)
    p["bls"] = jnp.zeros((1, action_dim), jnp.float32)
    p["wc1"] = xavier_uniform(ks[4], observ_dim, hidden)
    p["bc1"] = jnp.zeros((1, hidden), jnp.float32)
    p["wc2"] = xavier_uniform(ks[5], hidden, hidden)
    p["bc2"] = jnp.zeros((1, hidden), jnp.float32)
    p["wc3"] = xavier_uniform(ks[6], hidden, 1)
    p["bc3"] = jnp.zeros((1, 1), jnp.float32)
    return p


def pack_params(params, *, matmul_dtype=jnp.float32):
    """Pack actor + critic weights for the fused lane-dense kernel.

    Call ONCE and reuse the result across evaluate calls (weights are tiny,
    ~150 KB; repacking per-call costs several small XLA ops).
    """
    f32 = jnp.float32
    OBS, H = params["w1"].shape
    A = params["wmu"].shape[1]
    H2 = 2 * H                     # 128 packed hidden lanes (actor | critic)
    HEAD_W = 2 * A + 1             # mu | log_std | value  (no pad columns)

    w1p = jnp.concatenate([params["w1"], params["wc1"]], axis=1).astype(matmul_dtype)
    b1p = jnp.concatenate([params["b1"], params["bc1"]], axis=1).astype(f32)
    w2p = jnp.zeros((H2, H2), f32)
    w2p = (w2p.at[:H, :H].set(params["w2"])
              .at[H:, H:].set(params["wc2"])).astype(matmul_dtype)
    b2p = jnp.concatenate([params["b2"], params["bc2"]], axis=1).astype(f32)
    whp = jnp.zeros((H2, HEAD_W), f32)
    whp = (whp.at[:H, 0:A].set(params["wmu"])
              .at[:H, A:2 * A].set(params["wls"])
              .at[H:, 2 * A:2 * A + 1].set(params["wc3"])).astype(matmul_dtype)
    bhp = jnp.zeros((1, HEAD_W), f32)
    bhp = (bhp.at[:, 0:A].set(params["bmu"])
              .at[:, A:2 * A].set(params["bls"])
              .at[:, 2 * A:2 * A + 1].set(params["bc3"]))
    return dict(w1p=w1p, b1p=b1p, w2p=w2p, b2p=b2p, whp=whp, bhp=bhp,
                action_dim=A, observ_dim=OBS, hidden2=H2, head_w=HEAD_W,
                matmul_dtype=matmul_dtype)


def actor_critic_evaluate(state, action, params=None, *, action_scaling: float,
                          packed=None, block_b: int = 2048,
                          matmul_dtype=jnp.float32):
    """Pallas equivalent of ActorCritic.get_evaluate (continuous case).

    Returns (log_probs (B,), value (B,), entropy (B,)) plus mu/std for checking.
    Pass a cached `packed=pack_params(params, ...)` for repeated calls.
    Pass matmul_dtype=jnp.bfloat16 on v6e/v7x inference to halve HBM traffic
    for state/weights; accumulation and all transcendental math stay f32.
    """
    if packed is None:
        packed = pack_params(params, matmul_dtype=matmul_dtype)
    mdt = packed["matmul_dtype"]

    B, OBS = state.shape
    A = packed["action_dim"]
    H2 = packed["hidden2"]
    HEAD_W = packed["head_w"]
    OUT_W = 2 * A + 3              # mu | std | logp | value | entropy (no pad)
    # NOTE: matches the PyTorch module: clamp bounds are +/- log(action_scaling).
    # If action_scaling <= 1 the bounds degenerate/invert, exactly as in the original.
    max_log_of_std = float(np.log(action_scaling))

    # ----- batch tiling: balance TB to the batch (bounded tail padding) and
    # force >= 2 grid steps when B >= 16 so v7x can shard across both TCs.
    n_tiles = max(-(-B // block_b), 2 if B >= 16 else 1)
    TB = _round_up(-(-B // n_tiles), 8)
    B_pad = _round_up(B, TB)
    grid = (B_pad // TB,)

    s = state.astype(mdt)
    a = action.astype(jnp.float32)
    if B_pad != B:
        # zero-padded tail rows: zero state -> finite std/logp, no NaN; sliced off below
        s = jnp.pad(s, ((0, B_pad - B), (0, 0)))
        a = jnp.pad(a, ((0, B_pad - B), (0, 0)))

    kernel = functools.partial(
        _actor_critic_kernel,
        action_scaling=float(action_scaling),
        max_log_of_std=max_log_of_std,
        action_dim=A,
    )

    resident = lambda i: (0, 0)
    dsize = jnp.dtype(mdt).itemsize
    cost = pl.CostEstimate(
        flops=2 * B_pad * (OBS * H2 + H2 * H2 + H2 * HEAD_W),
        transcendentals=5 * B_pad * A,   # tanh, exp, log1p, log, recip per element
        bytes_accessed=(B_pad * OBS * dsize                          # state in
                        + B_pad * A * 4                              # action in
                        + (OBS * H2 + H2 * H2 + H2 * HEAD_W) * dsize  # weights
                        + (2 * H2 + HEAD_W) * 4                      # biases
                        + B_pad * OUT_W * 4),                        # output
    )

    out = pl.pallas_call(
        kernel,
        out_shape=jax.ShapeDtypeStruct((B_pad, OUT_W), jnp.float32),
        grid=grid,
        in_specs=[
            pl.BlockSpec((TB, OBS), lambda i: (i, 0)),     # state tile
            pl.BlockSpec((TB, A), lambda i: (i, 0)),       # action tile
            pl.BlockSpec((OBS, H2), resident),             # packed layer-1 weight
            pl.BlockSpec((1, H2), resident),
            pl.BlockSpec((H2, H2), resident),              # block-diag layer-2 weight
            pl.BlockSpec((1, H2), resident),
            pl.BlockSpec((H2, HEAD_W), resident),          # packed heads (2A+1 cols)
            pl.BlockSpec((1, HEAD_W), resident),
        ],
        out_specs=pl.BlockSpec((TB, OUT_W), lambda i: (i, 0)),
        compiler_params=pltpu.CompilerParams(
            dimension_semantics=("parallel",),
            vmem_limit_bytes=32 * 1024 * 1024,  # safe on v7x's 64 MiB VMEM
        ),
        cost_estimate=cost,
    )(s, a, packed["w1p"], packed["b1p"], packed["w2p"], packed["b2p"],
      packed["whp"], packed["bhp"])

    mu = out[:B, 0:A]
    std = out[:B, A:2 * A]
    logp = out[:B, 2 * A]
    val = out[:B, 2 * A + 1]
    ent = out[:B, 2 * A + 2]
    return logp, val, ent, mu, std


def _reference(state, action, p, action_scaling):
    """Pure-JAX reference mirroring the PyTorch semantics."""
    relu6 = lambda x: jnp.clip(x, 0.0, 6.0)
    max_log = jnp.log(jnp.float32(action_scaling))
    h = relu6(state @ p["w1"] + p["b1"])
    h = relu6(h @ p["w2"] + p["b2"])
    mu = jnp.tanh(h @ p["wmu"] + p["bmu"]) * action_scaling
    ls = jnp.clip(h @ p["wls"] + p["bls"], -max_log, max_log)
    std = jnp.log1p(jnp.exp(ls))
    c = relu6(state @ p["wc1"] + p["bc1"])
    c = relu6(c @ p["wc2"] + p["bc2"])
    v = (c @ p["wc3"] + p["bc3"])[:, 0]
    log_2pi = np.log(2.0 * np.pi)
    lp = (-0.5 * ((action - mu) / std) ** 2 - jnp.log(std) - 0.5 * log_2pi).sum(-1)
    ent = (0.5 + 0.5 * log_2pi + jnp.log(std)).sum(-1)
    return lp, v, ent, mu, std


if __name__ == "__main__":
    # small shapes consistent with the module's forward
    B, OBS, ACT = 8, 32, 6
    ACTION_SCALING = 2.0

    key = jax.random.PRNGKey(0)
    k_state, k_action, k_params = jax.random.split(key, 3)

    state = jax.random.normal(k_state, (B, OBS), jnp.float32)
    action = jax.random.normal(k_action, (B, ACT), jnp.float32)
    params = make_params(k_params, OBS, ACT)

    # pack once (cached across calls); f32 matmuls to meet the strict check
    packed = pack_params(params, matmul_dtype=jnp.float32)

    logp, value, entropy, mu, std = actor_critic_evaluate(
        state, action, action_scaling=ACTION_SCALING, packed=packed
    )
    jax.block_until_ready((logp, value, entropy, mu, std))

    # numerical check against pure-JAX reference
    r_logp, r_val, r_ent, r_mu, r_std = _reference(state, action, params, ACTION_SCALING)
    np.testing.assert_allclose(np.asarray(logp), np.asarray(r_logp), rtol=1e-5, atol=1e-5)
    np.testing.assert_allclose(np.asarray(value), np.asarray(r_val), rtol=1e-5, atol=1e-5)
    np.testing.assert_allclose(np.asarray(entropy), np.asarray(r_ent), rtol=1e-5, atol=1e-5)
    np.testing.assert_allclose(np.asarray(mu), np.asarray(r_mu), rtol=1e-5, atol=1e-5)
    np.testing.assert_allclose(np.asarray(std), np.asarray(r_std), rtol=1e-5, atol=1e-5)

    print("KERNEL_OK")
</pallas_src>

<mosaic_0001>
module attributes {stable_mosaic.version = 11 : i64} {
  func.func @_actor_critic_kernel(%arg0: i32, %arg1: memref<8x32xf32, #tpu.memory_space<vmem>>, %arg2: memref<8x6xf32, #tpu.memory_space<vmem>>, %arg3: memref<32x128xf32, #tpu.memory_space<vmem>>, %arg4: memref<1x128xf32, #tpu.memory_space<vmem>>, %arg5: memref<128x128xf32, #tpu.memory_space<vmem>>, %arg6: memref<1x128xf32, #tpu.memory_space<vmem>>, %arg7: memref<128x13xf32, #tpu.memory_space<vmem>>, %arg8: memref<1x13xf32, #tpu.memory_space<vmem>>, %arg9: memref<8x15xf32, #tpu.memory_space<vmem>>) attributes {dimension_semantics = [#tpu.dimension_semantics<parallel>], iteration_bounds = array<i64: 1>, scalar_prefetch = 0 : i64, scratch_operands = 0 : i64, tpu.core_type = #tpu.core_type<tc>, window_params = [{transform_indices = @transform_0, window_bounds = array<i64: 8, 32>}, {transform_indices = @transform_1, window_bounds = array<i64: 8, 6>}, {pipeline_mode = #tpu.pipeline_mode<synchronous>, transform_indices = @transform_2, window_bounds = array<i64: 32, 128>}, {pipeline_mode = #tpu.pipeline_mode<synchronous>, transform_indices = @transform_3, window_bounds = array<i64: 1, 128>}, {pipeline_mode = #tpu.pipeline_mode<synchronous>, transform_indices = @transform_4, window_bounds = array<i64: 128, 128>}, {pipeline_mode = #tpu.pipeline_mode<synchronous>, transform_indices = @transform_5, window_bounds = array<i64: 1, 128>}, {pipeline_mode = #tpu.pipeline_mode<synchronous>, transform_indices = @transform_6, window_bounds = array<i64: 128, 13>}, {pipeline_mode = #tpu.pipeline_mode<synchronous>, transform_indices = @transform_7, window_bounds = array<i64: 1, 13>}, {transform_indices = @transform_8, window_bounds = array<i64: 8, 15>}]} {
    %c0 = arith.constant 0 : index
    %c0_0 = arith.constant 0 : index
    %0 = vector.load %arg1[%c0, %c0_0] : memref<8x32xf32, #tpu.memory_space<vmem>>, vector<8x32xf32>
    %c0_1 = arith.constant 0 : index
    %c0_2 = arith.constant 0 : index
    %1 = vector.load %arg2[%c0_1, %c0_2] : memref<8x6xf32, #tpu.memory_space<vmem>>, vector<8x6xf32>
    %c0_3 = arith.constant 0 : index
    %c0_4 = arith.constant 0 : index
    %2 = vector.load %arg3[%c0_3, %c0_4] : memref<32x128xf32, #tpu.memory_space<vmem>>, vector<32x128xf32>
    %cst = arith.constant dense<0.000000e+00> : vector<8x128xf32>
    %3 = tpu.matmul %0, %2, %cst {dimension_numbers = #tpu.dot_dimension_numbers<[1], [0], [0], [1], [0, 0, 1, 1], [], []>} : vector<8x32xf32>, vector<32x128xf32>, vector<8x128xf32> -> vector<8x128xf32>
    %c0_5 = arith.constant 0 : index
    %c0_6 = arith.constant 0 : index
    %4 = vector.load %arg4[%c0_5, %c0_6] : memref<1x128xf32, #tpu.memory_space<vmem>>, vector<1x128xf32>
    %5 = vector.broadcast %4 : vector<1x128xf32> to vector<8x128xf32>
    %6 = arith.addf %3, %5 : vector<8x128xf32>
    %cst_7 = arith.constant 0.000000e+00 : f32
    %cst_8 = arith.constant 6.000000e+00 : f32
    %7 = vector.broadcast %cst_7 : f32 to vector<8x128xf32>
    %8 = arith.maximumf %7, %6 : vector<8x128xf32>
    %9 = vector.broadcast %cst_8 : f32 to vector<8x128xf32>
    %10 = arith.minimumf %9, %8 : vector<8x128xf32>
    %c0_9 = arith.constant 0 : index
    %c0_10 = arith.constant 0 : index
    %11 = vector.load %arg5[%c0_9, %c0_10] : memref<128x128xf32, #tpu.memory_space<vmem>>, vector<128x128xf32>
    %cst_11 = arith.constant dense<0.000000e+00> : vector<8x128xf32>
    %12 = tpu.matmul %10, %11, %cst_11 {dimension_numbers = #tpu.dot_dimension_numbers<[1], [0], [0], [1], [0, 0, 1, 1], [], []>} : vector<8x128xf32>, vector<128x128xf32>, vector<8x128xf32> -> vector<8x128xf32>
    %c0_12 = arith.constant 0 : index
    %c0_13 = arith.constant 0 : index
    %13 = vector.load %arg6[%c0_12, %c0_13] : memref<1x128xf32, #tpu.memory_space<vmem>>, vector<1x128xf32>
    %14 = vector.broadcast %13 : vector<1x128xf32> to vector<8x128xf32>
    %15 = arith.addf %12, %14 : vector<8x128xf32>
    %cst_14 = arith.constant 0.000000e+00 : f32
    %cst_15 = arith.constant 6.000000e+00 : f32
    %16 = vector.broadcast %cst_14 : f32 to vector<8x128xf32>
    %17 = arith.maximumf %16, %15 : vector<8x128xf32>
    %18 = vector.broadcast %cst_15 : f32 to vector<8x128xf32>
    %19 = arith.minimumf %18, %17 : vector<8x128xf32>
    %c0_16 = arith.constant 0 : index
    %c0_17 = arith.constant 0 : index
    %20 = vector.load %arg7[%c0_16, %c0_17] : memref<128x13xf32, #tpu.memory_space<vmem>>, vector<128x13xf32>
    %cst_18 = arith.constant dense<0.000000e+00> : vector<8x13xf32>
    %21 = tpu.matmul %19, %20, %cst_18 {dimension_numbers = #tpu.dot_dimension_numbers<[1], [0], [0], [1], [0, 0, 1, 1], [], []>} : vector<8x128xf32>, vector<128x13xf32>, vector<8x13xf32> -> vector<8x13xf32>
    %c0_19 = arith.constant 0 : index
    %c0_20 = arith.constant 0 : index
    %22 = vector.load %arg8[%c0_19, %c0_20] : memref<1x13xf32, #tpu.memory_space<vmem>>, vector<1x13xf32>
    %23 = vector.broadcast %22 : vector<1x13xf32> to vector<8x13xf32>
    %24 = arith.addf %21, %23 : vector<8x13xf32>
    %25 = vector.extract_strided_slice %24 {offsets = [0, 0], sizes = [8, 6], strides = [1, 1]} : vector<8x13xf32> to vector<8x6xf32>
    %26 = math.tanh %25 : vector<8x6xf32>
    %cst_21 = arith.constant 2.000000e+00 : f32
    %27 = vector.broadcast %cst_21 : f32 to vector<8x6xf32>
    %28 = arith.mulf %26, %27 : vector<8x6xf32>
    %29 = vector.extract_strided_slice %24 {offsets = [0, 6], sizes = [8, 6], strides = [1, 1]} : vector<8x13xf32> to vector<8x6xf32>
    %cst_22 = arith.constant -0.693147182 : f32
    %cst_23 = arith.constant 0.693147182 : f32
    %30 = vector.broadcast %cst_22 : f32 to vector<8x6xf32>
    %31 = arith.maximumf %30, %29 : vector<8x6xf32>
    %32 = vector.broadcast %cst_23 : f32 to vector<8x6xf32>
    %33 = arith.minimumf %32, %31 : vector<8x6xf32>
    %34 = math.exp %33 : vector<8x6xf32>
    %35 = math.log1p %34 : vector<8x6xf32>
    %36 = vector.extract_strided_slice %24 {offsets = [0, 12], sizes = [8, 1], strides = [1, 1]} : vector<8x13xf32> to vector<8x1xf32>
    %37 = math.log %35 : vector<8x6xf32>
    %38 = tpu.reciprocal %35 : vector<8x6xf32> -> vector<8x6xf32>
    %39 = arith.subf %1, %28 : vector<8x6xf32>
    %40 = arith.mulf %39, %38 : vector<8x6xf32>
    %cst_24 = arith.constant -5.000000e-01 : f32
    %41 = vector.broadcast %cst_24 : f32 to vector<8x6xf32>
    %42 = arith.mulf %41, %40 : vector<8x6xf32>
    %43 = arith.mulf %42, %40 : vector<8x6xf32>
    %44 = arith.subf %43, %37 : vector<8x6xf32>
    %cst_25 = arith.constant 0.918938517 : f32
    %45 = vector.broadcast %cst_25 : f32 to vector<8x6xf32>
    %46 = arith.subf %44, %45 : vector<8x6xf32>
    %cst_26 = arith.constant dense<0.000000e+00> : vector<8xf32>
    %47 = vector.multi_reduction <add>, %46, %cst_26 [1] : vector<8x6xf32> to vector<8xf32>
    %48 = vector.shape_cast %47 : vector<8xf32> to vector<8x1xf32>
    %cst_27 = arith.constant 1.41893852 : f32
    %49 = vector.broadcast %cst_27 : f32 to vector<8x6xf32>
    %50 = arith.addf %49, %37 : vector<8x6xf32>
    %cst_28 = arith.constant dense<0.000000e+00> : vector<8xf32>
    %51 = vector.multi_reduction <add>, %50, %cst_28 [1] : vector<8x6xf32> to vector<8xf32>
    %52 = vector.shape_cast %51 : vector<8xf32> to vector<8x1xf32>
    %c0_29 = arith.constant 0 : index
    %c0_30 = arith.constant 0 : index
    %53 = vector.load %arg9[%c0_29, %c0_30] : memref<8x15xf32, #tpu.memory_space<vmem>>, vector<8x6xf32>
    tpu.vector_store %arg9[%c0_29, %c0_30], %28 {strides = array<i32>} : memref<8x15xf32, #tpu.memory_space<vmem>>, vector<8x6xf32>,
    %c0_31 = arith.constant 0 : index
    %c6 = arith.constant 6 : index
    %54 = vector.load %arg9[%c0_31, %c6] : memref<8x15xf32, #tpu.memory_space<vmem>>, vector<8x6xf32>
    tpu.vector_store %arg9[%c0_31, %c6], %35 {strides = array<i32>} : memref<8x15xf32, #tpu.memory_space<vmem>>, vector<8x6xf32>,
    %c0_32 = arith.constant 0 : index
    %c12 = arith.constant 12 : index
    %55 = vector.load %arg9[%c0_32, %c12] : memref<8x15xf32, #tpu.memory_space<vmem>>, vector<8x1xf32>
    tpu.vector_store %arg9[%c0_32, %c12], %48 {strides = array<i32>} : memref<8x15xf32, #tpu.memory_space<vmem>>, vector<8x1xf32>,
    %c0_33 = arith.constant 0 : index
    %c13 = arith.constant 13 : index
    %56 = vector.load %arg9[%c0_33, %c13] : memref<8x15xf32, #tpu.memory_space<vmem>>, vector<8x1xf32>
    tpu.vector_store %arg9[%c0_33, %c13], %36 {strides = array<i32>} : memref<8x15xf32, #tpu.memory_space<vmem>>, vector<8x1xf32>,
    %c0_34 = arith.constant 0 : index
    %c14 = arith.constant 14 : index
    %57 = vector.load %arg9[%c0_34, %c14] : memref<8x15xf32, #tpu.memory_space<vmem>>, vector<8x1xf32>
    tpu.vector_store %arg9[%c0_34, %c14], %52 {strides = array<i32>} : memref<8x15xf32, #tpu.memory_space<vmem>>, vector<8x1xf32>,
    return
  }
  func.func @transform_0(%arg0: i32) -> (i32, i32) {
    %c0_i32 = arith.constant 0 : i32
    %c0_i32_0 = arith.constant 0 : i32
    return %arg0, %c0_i32 : i32, i32
  }
  func.func @transform_1(%arg0: i32) -> (i32, i32) {
    %c0_i32 = arith.constant 0 : i32
    %c0_i32_0 = arith.constant 0 : i32
    return %arg0, %c0_i32 : i32, i32
  }
  func.func @transform_2(%arg0: i32) -> (i32, i32) {
    %c0_i32 = arith.constant 0 : i32
    %c0_i32_0 = arith.constant 0 : i32
    %c0_i32_1 = arith.constant 0 : i32
    return %c0_i32, %c0_i32_0 : i32, i32
  }
  func.func @transform_3(%arg0: i32) -> (i32, i32) {
    %c0_i32 = arith.constant 0 : i32
    %c0_i32_0 = arith.constant 0 : i32
    %c0_i32_1 = arith.constant 0 : i32
    return %c0_i32, %c0_i32_0 : i32, i32
  }
  func.func @transform_4(%arg0: i32) -> (i32, i32) {
    %c0_i32 = arith.constant 0 : i32
    %c0_i32_0 = arith.constant 0 : i32
    %c0_i32_1 = arith.constant 0 : i32
    return %c0_i32, %c0_i32_0 : i32, i32
  }
  func.func @transform_5(%arg0: i32) -> (i32, i32) {
    %c0_i32 = arith.constant 0 : i32
    %c0_i32_0 = arith.constant 0 : i32
    %c0_i32_1 = arith.constant 0 : i32
    return %c0_i32, %c0_i32_0 : i32, i32
  }
  func.func @transform_6(%arg0: i32) -> (i32, i32) {
    %c0_i32 = arith.constant 0 : i32
    %c0_i32_0 = arith.constant 0 : i32
    %c0_i32_1 = arith.constant 0 : i32
    return %c0_i32, %c0_i32_0 : i32, i32
  }
  func.func @transform_7(%arg0: i32) -> (i32, i32) {
    %c0_i32 = arith.constant 0 : i32
    %c0_i32_0 = arith.constant 0 : i32
    %c0_i32_1 = arith.constant 0 : i32
    return %c0_i32, %c0_i32_0 : i32, i32
  }
  func.func @transform_8(%arg0: i32) -> (i32, i32) {
    %c0_i32 = arith.constant 0 : i32
    %c0_i32_0 = arith.constant 0 : i32
    return %arg0, %c0_i32 : i32, i32
  }
}

</mosaic_0001>

<bundles_post_ra>
// kernel: tpu_custom_call.1
= control target key start
LH: loop header
LB: loop body
LE: loop exit
PB: predicated region body
PF: predicated region fallthrough
CT: control target
= control target key end

     0   :  { %13 = vsyncpa [#allocation3], 0  ;;  %s796_s0 = inlined_call_operand.vmem [shape: f32[8,32], index: 0, kind: input, shape index: {}]   ;;  %s797_s1 = inlined_call_operand.vmem [shape: f32[8,6], index: 1, kind: input, shape index: {}]   ;;  %s798_s2 = inlined_call_operand.hbm [shape: f32[32,128], index: 2, kind: input, shape index: {}]   ;;  %s799_s3 = inlined_call_operand.vmem [shape: f32[1,128], index: 3, kind: input, shape index: {}]   ;;  %s800_s4 = inlined_call_operand.vmem [shape: f32[128,128], index: 4, kind: input, shape index: {}]   ;;  %s801_s5 = inlined_call_operand.vmem [shape: f32[1,128], index: 5, kind: input, shape index: {}]   ;;  %s802_s6 = inlined_call_operand.vmem [shape: f32[128,13], index: 6, kind: input, shape index: {}]   ;;  %s803_s7 = inlined_call_operand.vmem [shape: f32[1,13], index: 7, kind: input, shape index: {}]   ;;  %s804_s8 = inlined_call_operand.hbm [shape: f32[8,15], index: 8, kind: output, shape index: {}]  }
   0x1   :  { %14 = vsyncpa [#allocation4], 0  ;;  %s581_s27 = smov [#allocation2]  }
   0x2   :  { %s24_s28 = sshll.u32 %s581_s27, 4  ;;  %s25_s28 = int_to_ptr.vmem [resolvable:$true] %s24_s28 }
   0x3   :  { %s545_s29 = scalar_lea.vmem %s25_s28, 512  ;;  %p550_p1 = scmp.lt.s32.totalorder %s25_s28, %s25_s28 }
   0x4   :  { %p546_p0 = scmp.ne.s32.totalorder %s25_s28, %s545_s29  ;;  %p551_p2 = scmp.lt.s32.totalorder %s545_s29, %s545_s29 }
   0x6   :  { %p552_p3 = por %p551_p2, %p550_p1 }
   0x8   :  { %p553_p4 = pnand %p552_p3, %p546_p0 }
   0xa   :  { %556 = shalt.err (!%p553_p4)
}
   0xb   :  { %s582_s30 = smov 128   ;;  %s583_s9 = smov 8  }
   0xc   :  { %30 = dma.hbm_to_vmem [thread:$0]  %s798_s2, 512, %s25_s28, [#allocation3], %s582_s30, %s582_s30, %s583_s9  }
   0xd   :  { %577 = dma.done.wait [#allocation3], 512  }
   0xe   :  { %578 = vsyncadd [#allocation3], 4294966784  ;;  %v584_v0 = vmov 0.0   ;;  %vm585_vm0 = vmmov 0   ;;  %v49_v1 = vld [vmem:[#allocation2 + $0x18] sm:$0xff]  ;;  %v48_v2 = vld [vmem:[#allocation2 + $0x10] sm:$0xff] }
   0xf   :  { %438 = vmatprep.subr.mxu0 %v584_v0  ;;  %446 = vmatprep.mubr.msk.f32.mxu0 %vm585_vm0, %v584_v0  ;;  %v148_v3 = vld [vmem:[%s800_s4 + $0x78] sm:$0xff]  ;;  %v47_v4 = vld [vmem:[#allocation2 + $0x8] sm:$0xff]  ;;  %v147_v5 = vld [vmem:[%s800_s4 + $0x70] sm:$0xff]  ;;  %vm57_vm1 = vcmask 261120   ;;  %vm353_vm2 = vcmask 48128   ;;  %vm366_vm3 = vcmask 97328  }
  0x10   :  { %449 = vmatprep.subr.mxu1 %v584_v0  ;;  %481 = vmatprep.mubr.msk.f32.mxu1 %vm585_vm0, %v584_v0  ;;  %v146_v6 = vld [vmem:[%s800_s4 + $0x68] sm:$0xff]  ;;  %v46_v7 = vld [vmem:[#allocation2] sm:$0xff]  ;;  %v144_v10 = vld [vmem:[%s800_s4 + $0x58] sm:$0xff]  ;;  %s587_s9 = smov 1   ;;  %vm368_vm5 = vcmask 105568   ;;  %vm374_vm6 = vcmask 113768  }
  0x11   :  { %439 = vmatpush3.msra.mxu0 %v49_v1  ;;  %450 = vmatpush3.msra.mxu1 %v148_v3  ;;  %v44_v8 = vld [vmem:[%s796_s0] sm:$0xff]  ;;  %v143_v11 = vld [vmem:[%s800_s4 + $0x50] sm:$0xff]  ;;  %v142_v12 = vld [vmem:[%s800_s4 + $0x48] sm:$0xff]  ;;  %vm376_vm7 = vcmask 121968  }
  0x12   :  { %440 = vmatprep.subr.mxu0 %v584_v0  ;;  %451 = vmatprep.subr.mxu1 %v584_v0  ;;  %v145_v9 = vld [vmem:[%s800_s4 + $0x60] sm:$0xff]  ;;  %v140_v14 = vld [vmem:[%s800_s4 + $0x38] sm:$0xff]  ;;  %v139_v15 = vld [vmem:[%s800_s4 + $0x30] sm:$0xff] }
  0x13   :  { %441 = vmatpush3.msra.mxu0 %v48_v2  ;;  %452 = vmatpush3.msra.mxu1 %v147_v5  ;;  %v141_v13 = vld [vmem:[%s800_s4 + $0x40] sm:$0xff]  ;;  %v138_v16 = vld [vmem:[%s800_s4 + $0x28] sm:$0xff]  ;;  %v136_v18 = vld [vmem:[%s800_s4 + $0x18] sm:$0xff] }
  0x14   :  { %442 = vmatprep.subr.mxu0 %v584_v0  ;;  %453 = vmatprep.subr.mxu1 %v584_v0  ;;  %v137_v17 = vld [vmem:[%s800_s4 + $0x20] sm:$0xff]  ;;  %v135_v19 = vld [vmem:[%s800_s4 + $0x10] sm:$0xff]  ;;  %v134_v20 = vld [vmem:[%s800_s4 + $0x8] sm:$0xff] }
  0x15   :  { %443 = vmatpush3.msra.mxu0 %v47_v4  ;;  %454 = vmatpush3.msra.mxu1 %v146_v6  ;;  %v133_v21 = vld [vmem:[%s800_s4] sm:$0xff]  ;;  %v243_v22 = vld [vmem:[%s802_s6 + $0x78] sm:$0xff]  ;;  %v242_v23 = vld [vmem:[%s802_s6 + $0x70] sm:$0xff] }
  0x16   :  { %444 = vmatprep.subr.mxu0 %v584_v0  ;;  %455 = vmatprep.subr.mxu1 %v584_v0  ;;  %v241_v24 = vld [vmem:[%s802_s6 + $0x68] sm:$0xff]  ;;  %v240_v25 = vld [vmem:[%s802_s6 + $0x60] sm:$0xff]  ;;  %v239_v26 = vld [vmem:[%s802_s6 + $0x58] sm:$0xff] }
  0x17   :  { %445 = vmatpush3.msra.mxu0 %v46_v7  ;;  %456 = vmatpush3.msra.mxu1 %v145_v9  ;;  %v238_v27 = vld [vmem:[%s802_s6 + $0x50] sm:$0xff]  ;;  %v237_v28 = vld [vmem:[%s802_s6 + $0x48] sm:$0xff]  ;;  %v236_v29 = vld [vmem:[%s802_s6 + $0x40] sm:$0xff] }
  0x18   :  { %447 = vmatmul.mubr.msk.f32.vlgmr.msra.gmra.mxu0 %vm57_vm1, %v44_v8  ;;  %457 = vmatprep.subr.mxu1 %v584_v0  ;;  %v235_v30 = vld [vmem:[%s802_s6 + $0x38] sm:$0xff]  ;;  %v234_v31 = vld [vmem:[%s802_s6 + $0x30] sm:$0xff]  ;;  %v233_v32 = vld [vmem:[%s802_s6 + $0x28] sm:$0xff] }
  0x19   :  { %484 = vmatprep.subr.mxu0 %v584_v0  ;;  %458 = vmatpush3.msra.mxu1 %v144_v10  ;;  %v232_v33 = vld [vmem:[%s802_s6 + $0x20] sm:$0xff]  ;;  %v231_v40 = vld [vmem:[%s802_s6 + $0x18] sm:$0xff]  ;;  %v230_v41 = vld [vmem:[%s802_s6 + $0x10] sm:$0xff] }
  0x1a   :  { %516 = vmatprep.mubr.msk.f32.mxu0 %vm585_vm0, %v584_v0  ;;  %459 = vmatprep.subr.mxu1 %v584_v0  ;;  %v393_v34 = vld [vmem:[%s799_s3] ss:$0 sm:$0xff]  ;;  %v229_v42 = vld [vmem:[%s802_s6 + $0x8] sm:$0xff] }
  0x1b   :  { %460 = vmatpush3.msra.mxu1 %v143_v11  ;;  %485 = vmatpush3.msra.mxu0 %v243_v22  ;;  %v228_v43 = vld [vmem:[%s802_s6] sm:$0xff] }
  0x1c   :  { %461 = vmatprep.subr.mxu1 %v584_v0  ;;  %486 = vmatprep.subr.mxu0 %v584_v0  ;;  %v395_v44 = vld [vmem:[%s801_s5] ss:$0 sm:$0xff]  ;;  %s586_s5 = smov 122  }
  0x1d   :  { %462 = vmatpush3.msra.mxu1 %v142_v12  ;;  %487 = vmatpush3.msra.mxu0 %v242_v23  ;;  %v396_v50 = vld [vmem:[%s803_s7] ss:$0 sm:$0xff] }
  0x1e   :  { %463 = vmatprep.subr.mxu1 %v584_v0  ;;  %488 = vmatprep.subr.mxu0 %v584_v0  ;;  %v45_v7 = vld [vmem:[%s797_s1] sm:$0xff]  ;;  %s588_s1 = smov [#allocation5]  }
  0x1f   :  { %464 = vmatpush3.msra.mxu1 %v141_v13  ;;  %489 = vmatpush3.msra.mxu0 %v241_v24  ;;  %s384_s10 = sshll.u32 %s588_s1, 4  ;;  %s385_s10 = int_to_ptr.vmem [resolvable:$true] %s384_s10 }
  0x20   :  { %465 = vmatprep.subr.mxu1 %v584_v0  ;;  %490 = vmatprep.subr.mxu0 %v584_v0  ;;  %s557_s11 = scalar_lea.vmem %s385_s10, 128  ;;  %p562_p6 = scmp.lt.s32.totalorder %s385_s10, %s385_s10 }
  0x21   :  { %466 = vmatpush3.msra.mxu1 %v140_v14  ;;  %491 = vmatpush3.msra.mxu0 %v240_v25  ;;  %p558_p5 = scmp.ne.s32.totalorder %s385_s10, %s557_s11  ;;  %p563_p7 = scmp.lt.s32.totalorder %s557_s11, %s557_s11 }
  0x22   :  { %467 = vmatprep.subr.mxu1 %v584_v0  ;;  %492 = vmatprep.subr.mxu0 %v584_v0 }
  0x23   :  { %468 = vmatpush3.msra.mxu1 %v139_v15  ;;  %493 = vmatpush3.msra.mxu0 %v239_v26  ;;  %p564_p8 = por %p563_p7, %p562_p6 }
  0x24   :  { %469 = vmatprep.subr.mxu1 %v584_v0  ;;  %494 = vmatprep.subr.mxu0 %v584_v0 }
  0x25   :  { %470 = vmatpush3.msra.mxu1 %v138_v16  ;;  %495 = vmatpush3.msra.mxu0 %v238_v27  ;;  %p565_p9 = pnand %p564_p8, %p558_p5 }
  0x26   :  { %471 = vmatprep.subr.mxu1 %v584_v0  ;;  %496 = vmatprep.subr.mxu0 %v584_v0 }
  0x27   :  { %472 = vmatpush3.msra.mxu1 %v137_v17  ;;  %497 = vmatpush3.msra.mxu0 %v237_v28 }
  0x28   :  { %473 = vmatprep.subr.mxu1 %v584_v0  ;;  %498 = vmatprep.subr.mxu0 %v584_v0 }
  0x29   :  { %474 = vmatpush3.msra.mxu1 %v136_v18  ;;  %499 = vmatpush3.msra.mxu0 %v236_v29 }
  0x2a   :  { %475 = vmatprep.subr.mxu1 %v584_v0  ;;  %500 = vmatprep.subr.mxu0 %v584_v0 }
  0x2b   :  { %476 = vmatpush3.msra.mxu1 %v135_v19  ;;  %501 = vmatpush3.msra.mxu0 %v235_v30 }
  0x2c   :  { %477 = vmatprep.subr.mxu1 %v584_v0  ;;  %502 = vmatprep.subr.mxu0 %v584_v0 }
  0x2d   :  { %478 = vmatpush3.msra.mxu1 %v134_v20  ;;  %503 = vmatpush3.msra.mxu0 %v234_v31 }
  0x2e   :  { %479 = vmatprep.subr.mxu1 %v584_v0  ;;  %504 = vmatprep.subr.mxu0 %v584_v0 }
  0x2f   :  { %480 = vmatpush3.msra.mxu1 %v133_v21  ;;  %505 = vmatpush3.msra.mxu0 %v233_v32 }
  0x30   :  { %506 = vmatprep.subr.mxu0 %v584_v0 }
  0x31   :  { %507 = vmatpush3.msra.mxu0 %v232_v33 }
  0x32   :  { %508 = vmatprep.subr.mxu0 %v584_v0 }
  0x33   :  { %509 = vmatpush3.msra.mxu0 %v231_v40 }
  0x34   :  { %510 = vmatprep.subr.mxu0 %v584_v0 }
  0x35   :  { %511 = vmatpush3.msra.mxu0 %v230_v41 }
  0x36   :  { %512 = vmatprep.subr.mxu0 %v584_v0 }
  0x37   :  { %513 = vmatpush3.msra.mxu0 %v229_v42 }
  0x38   :  { %514 = vmatprep.subr.mxu0 %v584_v0 }
  0x39   :  { %515 = vmatpush3.msra.mxu0 %v228_v43 }
  0xd8   :  { %v127_v35 = vpop.f32.mrf.mxu0 }
  0xd9   :  { %v128_v36 = vadd.f32 %v393_v34, %v127_v35 }
  0xda   :  { %v448_v37 = vpop.f32.mrf.mxu0 }
  0xdb   :  { %v131_v38 = vmax.f32 %v128_v36, 0.0 }
  0xdd   :  { %v132_v39 = vmin.f32 %v131_v38, 6.0 }
  0xdf   :  { %482 = vmatmul.mubr.f32.vlgmr.msra.gmra.mxu1 %v132_v39 }
 0x19f   :  { %v222_v45 = vpop.f32.mrf.mxu1 }
 0x1a0   :  { %v223_v46 = vadd.f32 %v395_v44, %v222_v45 }
 0x1a1   :  { %v483_v47 = vpop.f32.mrf.mxu1 }
 0x1a2   :  { %v226_v48 = vmax.f32 %v223_v46, 0.0 }
 0x1a4   :  { %v227_v49 = vmin.f32 %v226_v48, 6.0 }
 0x1a6   :  { %517 = vmatmul.mubr.f32.vlgmr.msra.gmra.mxu0 %v227_v49 }
 0x266   :  { %v317_v51 = vpop.f32.mrf.mxu0 }
 0x267   :  { %v318_v52 = vadd.f32 %v396_v50, %v317_v51 }
 0x268   :  { %v518_v53 = vpop.f32.mrf.mxu0 }
 0x269   :  { %527 = vtanh.f32 %v318_v52  ;;  %v397_v54 = vclamps-f32 %v318_v52, 0.6931472 }
 0x26b   :  { %v325_v55 = vmul.f32 1.442695, %v397_v54 }
 0x26d   :  { %529 = vpow2.f32 %v325_v55 }
 0x276   :  { %v528_v56 = vpop.eup %527 }
 0x277   :  { %v322_v57 = vmul.f32 2.0, %v528_v56 }
 0x279   :  { %365 = vst.msk [vmem:[#allocation5] sm:$0xff] %vm353_vm2, %v322_v57  ;;  %v339_v8 = vsub.f32 %v45_v7, %v322_v57 }
 0x27a   :  { %v530_v58 = vpop.eup %529 }
 0x27b   :  { %v327_v59 = vadd.f32 1.0, %v530_v58  ;;  %v330_v60 = vmul.f32 -0.5, %v530_v58  ;;  %v333_v62 = vand.u32 2147483647, %v530_v58 }
 0x27d   :  { %531 = vlog2.f32 %v327_v59  ;;  %v331_v61 = vadd.f32 1.0, %v330_v60  ;;  %vm334_vm4 = vcmp.lt.f32.partialorder %v333_v62, 0.0004427343 }
 0x27f   :  { %v332_v1 = vmul.f32 %v530_v58, %v331_v61 }
 0x28a   :  { %v532_v63 = vpop.eup %531 }
 0x28b   :  { %v329_v0 = vmul.f32 0.6931472, %v532_v63 }
 0x28d   :  { %v335_v2 = vsel %vm334_vm4, %v332_v1, %v329_v0 }
 0x28e   :  { %533 = vrcp.f32 %v335_v2  ;;  %367 = vst.msk [vmem:[#allocation5] sm:$0xff] %vm366_vm3, %v335_v2 }
 0x28f   :  { %535 = vlog2.f32 %v335_v2 }
 0x29b   :  { %v534_v3 = vpop.eup %533 }
 0x29c   :  { %v536_v4 = vpop.eup %535  ;;  %341 = vrot.lane.b32.xlu0 %v534_v3, %s586_s5 }
 0x29d   :  { %v337_v5 = vmul.f32 0.6931472, %v536_v4 }
 0x29f   :  { %v357_v6 = vadd.f32 1.4189385, %v337_v5 }
 0x2a0   :  { %348 = vrot.lane.b32.xlu0 %v337_v5, %s586_s5 }
 0x2a1   :  { %359 = vrot.lane.b32.xlu1 %v357_v6, %s586_s5 }
 0x30e   :  { %v342_v9 = vpop.permute.xlu0 %341 }
 0x30f   :  { %v344_v10 = vmul.f32 %v342_v9, %v339_v8 }
 0x311   :  { %v345_v11 = vmul.f32 -0.5, %v344_v10 }
 0x312   :  { %v349_v14 = vpop.permute.xlu0 %348 }
 0x313   :  { %v346_v12 = vmul.f32 %v345_v11, %v344_v10  ;;  %v360_v13 = vpop.permute.xlu1 %359 }
 0x314   :  { %v362_v15 = vsel %vm353_vm2, %v360_v13, 0.0 }
 0x315   :  { %v351_v16 = vsub.f32 %v346_v12, %v349_v14  ;;  %363 = vadd.xlane.f32.xlu0 %v362_v15 }
 0x317   :  { %v398_v17 = vadd.f32 -0.9189385, %v351_v16 }
 0x319   :  { %v354_v18 = vsel %vm353_vm2, %v398_v17, 0.0 }
 0x31a   :  { %355 = vadd.xlane.f32.xlu1 %v354_v18 }
 0x32b   :  { %371 = vrot.lane.b32.xlu0 %v318_v52, %s587_s9 }
 0x39e   :  { %v364_v19 = vpop.xlane.xlu0 %363 }
 0x3a2   :  { %v372_v21 = vpop.permute.xlu0 %371 }
 0x3a3   :  { %v356_v20 = vpop.xlane.xlu1 %355 }
 0x3a4   :  { %369 = vst.msk [vmem:[#allocation5] sm:$0xff] %vm368_vm5, %v356_v20 }
 0x3a5   :  { %375 = vst.msk [vmem:[#allocation5] sm:$0xff] %vm374_vm6, %v372_v21 }
 0x3a6   :  { %377 = vst.msk [vmem:[#allocation5] sm:$0xff] %vm376_vm7, %v364_v19 }
 0x3a7   :  { %568 = shalt.err (!%p565_p9)
}
 0x3a8   :  { %387 = dma.vmem_to_hbm [thread:$0]  %s385_s10, 128, %s804_s8, [#allocation4]  }
 0x3a9   :  { %579 = dma.done.wait [#allocation4], 128  }
 0x3aa   :  { %580 = vsyncadd [#allocation4], 4294967168 }
 0x3ab   :  { %391 = vsyncpa [#allocation3], 1 }
 0x3ac   :  { %392 = vsyncpa [#allocation4], 1 }

</bundles_post_ra>
